<compile_context>
chip_gen: v7x
topology: tpu7x:2x2x1
jax: 0.10.0
libtpu: 0.0.40
codegen_flags: <defaults>
</compile_context>

<pallas_src>
import functools

import jax
import jax.numpy as jnp
from jax.experimental import pallas as pl
from jax.experimental.pallas import tpu as pltpu

INT_STEPS = 7


def _repeat_rows(x, r):
    # [n, L] -> [n*r, L], output row j = x[j // r]
    n, L = x.shape
    return jnp.broadcast_to(x[:, None, :], (n, r, L)).reshape(n * r, L)


def _tile_rows(x, t):
    # [m, L] -> [t*m, L], output row j = x[j % m]
    m, L = x.shape
    return jnp.broadcast_to(x[None, :, :], (t, m, L)).reshape(t * m, L)


def _svf_step_kernel(flow_ref, flow_tile_ref, out_ref, *, D, H, W, TM):
    """One squaring step: out_tile = flow_tile + grid_sample(flow, grid + flow_tile)."""
    HW = H * W
    P = D * HW
    t = pl.program_id(1)

    flow = flow_ref[0]          # [3, P]  whole-volume flow for this batch element
    flow_t = flow_tile_ref[0]   # [3, TM] flow at this tile's destination voxels

    # Destination voxel coordinates of this tile, decoded from the linear index
    # (exact in f32 for realistic volume sizes; exact here since HW, W are pow2).
    q = (t * TM + jax.lax.broadcasted_iota(jnp.int32, (1, TM), 1)).astype(jnp.float32)
    qd = jnp.floor(q / HW)
    qr = q - qd * HW
    qh = jnp.floor(qr / W)
    qw = qr - qh * W

    # Sample locations in voxel space (what nnf.grid_sample(align_corners=True)
    # sees after the module's normalize / permute / channel-flip dance).
    loc_d = qd + flow_t[0:1, :]   # [1, TM]
    loc_h = qh + flow_t[1:2, :]
    loc_w = qw + flow_t[2:3, :]

    # Trilinear tent weights W^T[s, q]: source voxel s on sublanes, destination
    # voxel q on lanes; the relu clamp reproduces padding_mode='zeros' exactly.
    if W % 8 == 0:
        # Separable build: evaluate tents on small slabs, expand by broadcast.
        # source index s = dh*W + w, with dh = d*H + h.
        dh = jax.lax.broadcasted_iota(jnp.int32, (D * H, 1), 0).astype(jnp.float32)
        sd = jnp.floor(dh / H)
        sh = dh - sd * H
        w_dh = (jnp.maximum(1.0 - jnp.abs(loc_d - sd), 0.0)
                * jnp.maximum(1.0 - jnp.abs(loc_h - sh), 0.0))           # [D*H, TM]
        sw = jax.lax.broadcasted_iota(jnp.int32, (W, 1), 0).astype(jnp.float32)
        w_w = jnp.maximum(1.0 - jnp.abs(loc_w - sw), 0.0)                # [W, TM]
        wmt = _repeat_rows(w_dh, W) * _tile_rows(w_w, D * H)             # [P, TM]
    else:
        # Fallback for sublane-unfriendly W: direct tent eval on [P, TM].
        s = jax.lax.broadcasted_iota(jnp.int32, (P, 1), 0).astype(jnp.float32)
        sd = jnp.floor(s / HW)
        sr = s - sd * HW
        sh = jnp.floor(sr / W)
        sw = sr - sh * W
        wmt = (jnp.maximum(1.0 - jnp.abs(loc_d - sd), 0.0)
               * jnp.maximum(1.0 - jnp.abs(loc_h - sh), 0.0)
               * jnp.maximum(1.0 - jnp.abs(loc_w - sw), 0.0))

    sampled = jnp.dot(flow, wmt, preferred_element_type=jnp.float32)     # [3, TM]
    out_ref[0] = flow_t + sampled


def _pick_dest_tile(P):
    """Destination (lane) tile size: multiple of 128 dividing P, weight tile <= 4 MiB."""
    if P % 128 != 0:
        return P
    budget = 4 * 1024 * 1024
    for cand in (1024, 512, 256):
        if P % cand == 0 and P * cand * 4 <= budget and P // cand >= 2:
            return cand
    return 128


def integration_block(svf, int_steps=INT_STEPS):
    """svf: [B, 3, D, H, W] -> integrated displacement field [B, 3, D, H, W] (f32)."""
    svf = svf.astype(jnp.float32)
    B, C, D, H, W = svf.shape
    assert C == 3, "Integration_block expects a 3-channel 3D velocity field"
    P = D * H * W
    TM = _pick_dest_tile(P)
    n_tiles = P // TM

    kernel = functools.partial(_svf_step_kernel, D=D, H=H, W=W, TM=TM)
    step = pl.pallas_call(
        kernel,
        out_shape=jax.ShapeDtypeStruct((B, 3, P), jnp.float32),
        grid=(B, n_tiles),
        in_specs=[
            pl.BlockSpec((1, 3, P), lambda b, t: (b, 0, 0)),    # whole-volume flow
            pl.BlockSpec((1, 3, TM), lambda b, t: (b, 0, t)),   # this tile's flow
        ],
        out_specs=pl.BlockSpec((1, 3, TM), lambda b, t: (b, 0, t)),
        compiler_params=pltpu.CompilerParams(
            dimension_semantics=("parallel", "parallel"),
            vmem_limit_bytes=48 * 1024 * 1024,
        ),
        cost_estimate=pl.CostEstimate(
            flops=int(B * 11 * P * P),
            transcendentals=0,
            bytes_accessed=int(B * 3 * P * 4 * (n_tiles + 2)),
        ),
    )

    flow0 = svf.reshape(B, 3, P) * jnp.float32(1.0 / (2.0 ** int_steps))
    flow = jax.lax.fori_loop(0, int_steps, lambda i, f: step(f, f), flow0)
    return flow.reshape(B, 3, D, H, W)


# ---------------- pure-JAX reference (gather-based grid_sample) ----------------
def _ref_trilinear_sample(vol, loc):
    B, C, D, H, W = vol.shape
    P = D * H * W
    vf = vol.reshape(B, C, P)
    z = loc[:, 0].reshape(B, P)
    y = loc[:, 1].reshape(B, P)
    x = loc[:, 2].reshape(B, P)
    z0, y0, x0 = jnp.floor(z), jnp.floor(y), jnp.floor(x)
    out = jnp.zeros((B, C, P), jnp.float32)
    for dz in (0.0, 1.0):
        for dy in (0.0, 1.0):
            for dx in (0.0, 1.0):
                zi, yi, xi = z0 + dz, y0 + dy, x0 + dx
                w = (1.0 - jnp.abs(z - zi)) * (1.0 - jnp.abs(y - yi)) * (1.0 - jnp.abs(x - xi))
                inb = ((zi >= 0) & (zi <= D - 1) & (yi >= 0) & (yi <= H - 1)
                       & (xi >= 0) & (xi <= W - 1))
                q = (jnp.clip(zi, 0, D - 1) * (H * W)
                     + jnp.clip(yi, 0, H - 1) * W
                     + jnp.clip(xi, 0, W - 1)).astype(jnp.int32)
                qb = jnp.broadcast_to(q[:, None, :], (B, C, P))
                gathered = jnp.take_along_axis(vf, qb, axis=2)
                out = out + jnp.where(inb[:, None, :], w[:, None, :] * gathered, 0.0)
    return out.reshape(B, C, D, H, W)


def ref_integration(svf, int_steps=INT_STEPS):
    B, C, D, H, W = svf.shape
    dd, hh, ww = jnp.meshgrid(jnp.arange(D, dtype=jnp.float32),
                              jnp.arange(H, dtype=jnp.float32),
                              jnp.arange(W, dtype=jnp.float32), indexing="ij")
    grid = jnp.stack([dd, hh, ww])[None]
    flow = svf.astype(jnp.float32) / (2.0 ** int_steps)
    for _ in range(int_steps):
        loc = grid + flow
        flow = flow + _ref_trilinear_sample(flow, loc)
    return flow


if __name__ == "__main__":
    key = jax.random.PRNGKey(0)
    B, C, D, H, W = 2, 3, 8, 8, 8
    svf = jax.random.normal(key, (B, C, D, H, W), dtype=jnp.float32) * 2.0

    out = jax.block_until_ready(jax.jit(integration_block)(svf))
    ref = jax.block_until_ready(ref_integration(svf))

    assert out.shape == (B, C, D, H, W)
    assert bool(jnp.all(jnp.isfinite(out)))
    err = float(jnp.max(jnp.abs(out - ref)))
    assert err < 1e-4, f"mismatch vs reference: {err}"
    print("KERNEL_OK")
</pallas_src>

<mosaic_0001>
module attributes {stable_mosaic.version = 11 : i64} {
  func.func @_svf_step_kernel(%arg0: i32, %arg1: i32, %arg2: memref<1x3x512xf32, #tpu.memory_space<vmem>>, %arg3: memref<1x3x256xf32, #tpu.memory_space<vmem>>, %arg4: memref<1x3x256xf32, #tpu.memory_space<vmem>>) attributes {dimension_semantics = [#tpu.dimension_semantics<parallel>, #tpu.dimension_semantics<parallel>], iteration_bounds = array<i64: 2, 2>, scalar_prefetch = 0 : i64, scratch_operands = 0 : i64, tpu.core_type = #tpu.core_type<tc>, window_params = [{transform_indices = @transform_0, window_bounds = array<i64: 1, 3, 512>}, {transform_indices = @transform_1, window_bounds = array<i64: 1, 3, 256>}, {transform_indices = @transform_2, window_bounds = array<i64: 1, 3, 256>}]} {
    %c0 = arith.constant 0 : index
    %c0_0 = arith.constant 0 : index
    %c0_1 = arith.constant 0 : index
    %0 = vector.load %arg2[%c0, %c0_0, %c0_1] : memref<1x3x512xf32, #tpu.memory_space<vmem>>, vector<1x3x512xf32>
    %1 = vector.shape_cast %0 : vector<1x3x512xf32> to vector<3x512xf32>
    %c0_2 = arith.constant 0 : index
    %c0_3 = arith.constant 0 : index
    %c0_4 = arith.constant 0 : index
    %2 = vector.load %arg3[%c0_2, %c0_3, %c0_4] : memref<1x3x256xf32, #tpu.memory_space<vmem>>, vector<1x3x256xf32>
    %3 = vector.shape_cast %2 : vector<1x3x256xf32> to vector<3x256xf32>
    %c256_i32 = arith.constant 256 : i32
    %4 = arith.muli %arg1, %c256_i32 : i32
    %5 = tpu.iota {dimensions = array<i32: 1>} : vector<1x256xi32>
    %6 = vector.broadcast %4 : i32 to vector<1x256xi32>
    %7 = arith.addi %6, %5 : vector<1x256xi32>
    %8 = arith.sitofp %7 : vector<1x256xi32> to vector<1x256xf32>
    %cst = arith.constant 6.400000e+01 : f32
    %9 = vector.broadcast %cst : f32 to vector<1x256xf32>
    %10 = arith.divf %8, %9 : vector<1x256xf32>
    %11 = math.floor %10 : vector<1x256xf32>
    %cst_5 = arith.constant 6.400000e+01 : f32
    %12 = vector.broadcast %cst_5 : f32 to vector<1x256xf32>
    %13 = arith.mulf %11, %12 : vector<1x256xf32>
    %14 = arith.subf %8, %13 : vector<1x256xf32>
    %cst_6 = arith.constant 8.000000e+00 : f32
    %15 = vector.broadcast %cst_6 : f32 to vector<1x256xf32>
    %16 = arith.divf %14, %15 : vector<1x256xf32>
    %17 = math.floor %16 : vector<1x256xf32>
    %cst_7 = arith.constant 8.000000e+00 : f32
    %18 = vector.broadcast %cst_7 : f32 to vector<1x256xf32>
    %19 = arith.mulf %17, %18 : vector<1x256xf32>
    %20 = arith.subf %14, %19 : vector<1x256xf32>
    %21 = vector.extract_strided_slice %3 {offsets = [0, 0], sizes = [1, 256], strides = [1, 1]} : vector<3x256xf32> to vector<1x256xf32>
    %22 = arith.addf %11, %21 : vector<1x256xf32>
    %23 = vector.extract_strided_slice %3 {offsets = [1, 0], sizes = [1, 256], strides = [1, 1]} : vector<3x256xf32> to vector<1x256xf32>
    %24 = arith.addf %17, %23 : vector<1x256xf32>
    %25 = vector.extract_strided_slice %3 {offsets = [2, 0], sizes = [1, 256], strides = [1, 1]} : vector<3x256xf32> to vector<1x256xf32>
    %26 = arith.addf %20, %25 : vector<1x256xf32>
    %27 = tpu.iota {dimensions = array<i32: 0>} : vector<64x1xi32>
    %28 = arith.sitofp %27 : vector<64x1xi32> to vector<64x1xf32>
    %cst_8 = arith.constant 8.000000e+00 : f32
    %29 = vector.broadcast %cst_8 : f32 to vector<64x1xf32>
    %30 = arith.divf %28, %29 : vector<64x1xf32>
    %31 = math.floor %30 : vector<64x1xf32>
    %cst_9 = arith.constant 8.000000e+00 : f32
    %32 = vector.broadcast %cst_9 : f32 to vector<64x1xf32>
    %33 = arith.mulf %31, %32 : vector<64x1xf32>
    %34 = arith.subf %28, %33 : vector<64x1xf32>
    %35 = vector.broadcast %22 : vector<1x256xf32> to vector<64x256xf32>
    %36 = vector.broadcast %31 : vector<64x1xf32> to vector<64x256xf32>
    %37 = arith.subf %35, %36 : vector<64x256xf32>
    %38 = math.absf %37 : vector<64x256xf32>
    %cst_10 = arith.constant 1.000000e+00 : f32
    %39 = vector.broadcast %cst_10 : f32 to vector<64x256xf32>
    %40 = arith.subf %39, %38 : vector<64x256xf32>
    %cst_11 = arith.constant 0.000000e+00 : f32
    %41 = vector.broadcast %cst_11 : f32 to vector<64x256xf32>
    %42 = arith.maximumf %40, %41 : vector<64x256xf32>
    %43 = vector.broadcast %24 : vector<1x256xf32> to vector<64x256xf32>
    %44 = vector.broadcast %34 : vector<64x1xf32> to vector<64x256xf32>
    %45 = arith.subf %43, %44 : vector<64x256xf32>
    %46 = math.absf %45 : vector<64x256xf32>
    %cst_12 = arith.constant 1.000000e+00 : f32
    %47 = vector.broadcast %cst_12 : f32 to vector<64x256xf32>
    %48 = arith.subf %47, %46 : vector<64x256xf32>
    %cst_13 = arith.constant 0.000000e+00 : f32
    %49 = vector.broadcast %cst_13 : f32 to vector<64x256xf32>
    %50 = arith.maximumf %48, %49 : vector<64x256xf32>
    %51 = arith.mulf %42, %50 : vector<64x256xf32>
    %52 = tpu.iota {dimensions = array<i32: 0>} : vector<8x1xi32>
    %53 = arith.sitofp %52 : vector<8x1xi32> to vector<8x1xf32>
    %54 = vector.broadcast %26 : vector<1x256xf32> to vector<8x256xf32>
    %55 = vector.broadcast %53 : vector<8x1xf32> to vector<8x256xf32>
    %56 = arith.subf %54, %55 : vector<8x256xf32>
    %57 = math.absf %56 : vector<8x256xf32>
    %cst_14 = arith.constant 1.000000e+00 : f32
    %58 = vector.broadcast %cst_14 : f32 to vector<8x256xf32>
    %59 = arith.subf %58, %57 : vector<8x256xf32>
    %cst_15 = arith.constant 0.000000e+00 : f32
    %60 = vector.broadcast %cst_15 : f32 to vector<8x256xf32>
    %61 = arith.maximumf %59, %60 : vector<8x256xf32>
    %62 = vector.shape_cast %51 : vector<64x256xf32> to vector<64x1x256xf32>
    %63 = vector.shape_cast %62 : vector<64x1x256xf32> to vector<64x1x256xf32>
    %64 = vector.broadcast %63 : vector<64x1x256xf32> to vector<64x8x256xf32>
    %65 = vector.shape_cast %64 : vector<64x8x256xf32> to vector<512x256xf32>
    %66 = vector.shape_cast %61 : vector<8x256xf32> to vector<1x8x256xf32>
    %67 = vector.shape_cast %66 : vector<1x8x256xf32> to vector<1x8x256xf32>
    %68 = vector.broadcast %67 : vector<1x8x256xf32> to vector<64x8x256xf32>
    %69 = vector.shape_cast %68 : vector<64x8x256xf32> to vector<512x256xf32>
    %70 = arith.mulf %65, %69 : vector<512x256xf32>
    %cst_16 = arith.constant dense<0.000000e+00> : vector<3x256xf32>
    %71 = tpu.matmul %1, %70, %cst_16 {dimension_numbers = #tpu.dot_dimension_numbers<[1], [0], [0], [1], [0, 0, 1, 1], [], []>} : vector<3x512xf32>, vector<512x256xf32>, vector<3x256xf32> -> vector<3x256xf32>
    %72 = arith.addf %3, %71 : vector<3x256xf32>
    %c0_17 = arith.constant 0 : index
    %c0_18 = arith.constant 0 : index
    %c0_19 = arith.constant 0 : index
    %73 = vector.load %arg4[%c0_17, %c0_18, %c0_19] : memref<1x3x256xf32, #tpu.memory_space<vmem>>, vector<1x3x256xf32>
    %74 = vector.shape_cast %73 : vector<1x3x256xf32> to vector<3x256xf32>
    %75 = vector.shape_cast %72 : vector<3x256xf32> to vector<1x3x256xf32>
    tpu.vector_store %arg4[%c0_17, %c0_18, %c0_19], %75 {strides = array<i32>} : memref<1x3x256xf32, #tpu.memory_space<vmem>>, vector<1x3x256xf32>,
    return
  }
  func.func @transform_0(%arg0: i32, %arg1: i32) -> (i32, i32, i32) {
    %c0_i32 = arith.constant 0 : i32
    %c0_i32_0 = arith.constant 0 : i32
    %c0_i32_1 = arith.constant 0 : i32
    return %arg0, %c0_i32, %c0_i32_0 : i32, i32, i32
  }
  func.func @transform_1(%arg0: i32, %arg1: i32) -> (i32, i32, i32) {
    %c0_i32 = arith.constant 0 : i32
    %c0_i32_0 = arith.constant 0 : i32
    return %arg0, %c0_i32, %arg1 : i32, i32, i32
  }
  func.func @transform_2(%arg0: i32, %arg1: i32) -> (i32, i32, i32) {
    %c0_i32 = arith.constant 0 : i32
    %c0_i32_0 = arith.constant 0 : i32
    return %arg0, %c0_i32, %arg1 : i32, i32, i32
  }
}

</mosaic_0001>

<bundles_post_ra>
// kernel: closed_call.4
= control target key start
LH: loop header
LB: loop body
LE: loop exit
PB: predicated region body
PF: predicated region fallthrough
CT: control target
= control target key end

     0   :  { %s2182_s9 = smov 0   ;;  %s2184_s10 = smov 0   ;;  %s2773_s0 = inlined_call_operand.vmem [shape: f32[2,3,512], index: 0, kind: input, shape index: {}, may-alias: {0,1}]   ;;  %s2774_s1 = inlined_call_operand.vmem [shape: f32[2,3,512], index: 1, kind: input, shape index: {}, may-alias: {0,1}]   ;;  %s2775_s2 = inlined_call_operand.vmem [shape: f32[2,3,512], index: 2, kind: output, shape index: {}]  }
   0x1   :  { %s2186_s11 = smov 0   ;;  %s2188_s12 = smov 0  }
   0x2   :  { %s2190_s13 = smov 0  }
   0x3 LB: > { %s21_s14 = sadd.s32 1, %s2156_s11  ;;  %s24_s15 = sadd.s32 1, %s2160_s12  ;;  %s2164_s13 = sphi %s2190_s13, %s12_s13   ;;  %s2160_s12 = sphi %s2188_s12, %s2779_s12   ;;  %s2156_s11 = sphi %s2186_s11, %s2778_s11   ;;  %s2152_s10 = sphi %s2184_s10, %s2777_s10   ;;  %s2148_s9 = sphi %s2182_s9, %s2776_s9  }
   0x4   : > { %p22_p0 = scmp.ge.s32.totalorder %s21_s14, 2  ;;  %p1939_p1 = scmp.ge.s32.totalorder %s2164_s13, 1 }
   0x5   : > { %p143_p2 = scmp.lt.s32.totalorder %s2164_s13, 5 }
   0x6   : > { %s2781_s14 = smov (%p22_p0, %s21_s14), 0  ;;  %s2783_s15 = smov (!%p22_p0, %s24_s15), %s2160_s12 }
   0x7   : > { %p144_p3 = pnand %p1939_p1, %p143_p2  ;;  %p26_p4 = scmp.ge.s32.totalorder %s2783_s15, 2 }
   0x8   : > { %p178_p5 = scmp.lt.s32.totalorder (!%p144_p3), %s2152_s10, 1  ;;  %s1942_s16 = sshll.u32 (!%p144_p3), %s2148_s9, 1  ;;  %v207_v0 = vlaneseq (!%p144_p3)  ;;  %v2166_v1 = vmov (!%p144_p3), 1966171168  }
   0x9   : > { %s2785_s15 = smov (%p26_p4, %s2783_s15), 0  ;;  %147 = sbr.rel (%p144_p3) target bundleno = 416 (0x1a0), region = 28 }
   0xa   : > { %p186_p6 = scmp.lt.s32.totalorder (!%p144_p3), %s1942_s16, 3  ;;  %s1948_s17 = sshll.u32 (!%p144_p3), %s2148_s9, 8  ;;  %v514_v2 = vunpack.c.l.s4 (!%p144_p3), %v2166_v1  ;;  %v208_v3 = vand.u32 (!%p144_p3), 127, %v207_v0  ;;  %v2214_v5 = vshrl.u32 (!%p144_p3), %v207_v0, 7 }
   0xb   : > { %v210_v4 = vstv (!%p144_p3), %s1948_s17 }
   0xc   : > { %v515_v6 = vunpack.c.0.s8 (!%p144_p3), %v514_v2  ;;  %v209_v7 = vadd.s32 (!%p144_p3), 128, %v208_v3  ;;  %v211_v8 = vadd.s32 (!%p144_p3), %v210_v4, %v208_v3  ;;  %v2218_v9 = vsub.s32 (!%p144_p3), 0, %v2214_v5 }
   0xd   : > { %v240_v10 = vsub.s32 (!%p144_p3), 4, %v2214_v5  ;;  %v2224_v11 = vsub.s32 (!%p144_p3), 1, %v2214_v5  ;;  %v252_v12 = vsub.s32 (!%p144_p3), 5, %v2214_v5  ;;  %v260_v13 = vsub.s32 (!%p144_p3), 2, %v2214_v5 }
   0xe   : > { %v264_v14 = vsub.s32 (!%p144_p3), 6, %v2214_v5  ;;  %v212_v15 = vadd.s32 (!%p144_p3), %v210_v4, %v209_v7  ;;  %v213_v16 = vcvt.s32.f32 (!%p144_p3), %v211_v8  ;;  %v2231_v17 = vcvt.s32.f32 (!%p144_p3), %v2214_v5 }
   0xf   : > { %v2234_v18 = vsub.s32 (!%p144_p3), %v515_v6, %v2214_v5  ;;  %v275_v19 = vadd.s32 (!%p144_p3), 32, %v2214_v5  ;;  %v272_v20 = vadd.s32 (!%p144_p3), 8, %v2214_v5  ;;  %v2246_v21 = vadd.s32 (!%p144_p3), 40, %v2214_v5 }
  0x10   : > { %s2787_s10 = smov (!%p178_p5, %s2152_s10), 1  ;;  %s2789_s16 = smov (!%p186_p6, %s1942_s16), 3  ;;  %v2249_v22 = vadd.s32 16, %v2214_v5  ;;  %v214_v24 = vcvt.s32.f32 %v212_v15  ;;  %v216_v25 = vmul.f32 0.015625, %v213_v16  ;;  %v287_v26 = vmul.f32 0.125, %v2231_v17 }
  0x11   : > { %s1943_s18 = sshll.u32 %s2787_s10, 2  ;;  %v2254_v27 = vadd.s32 48, %v2214_v5  ;;  %v283_v37 = vcvt.s32.f32 %v275_v19  ;;  %v280_v38 = vcvt.s32.f32 %v272_v20  ;;  %v284_v39 = vcvt.s32.f32 %v2246_v21  ;;  %s1951_s24 = sshll.u32 %s2787_s10, 4 }
  0x12   : > { %s2221_s19 = sadd.s32 %s1943_s18, %s2789_s16  ;;  %v217_v32 = vmul.f32 0.015625, %v214_v24  ;;  %v218_v33 = vfloor.f32 %v216_v25  ;;  %v295_v36 = vfloor.f32 %v287_v26  ;;  %v281_v43 = vcvt.s32.f32 %v2249_v22  ;;  %s2516_s27 = scalar_lea.vmem %s2773_s0, %s1951_s24 }
  0x13   : > { %s1944_s20 = sshll.u32 %s2221_s19, 2  ;;  %v291_v45 = vmul.f32 0.125, %v283_v37  ;;  %v288_v46 = vmul.f32 0.125, %v280_v38  ;;  %v292_v47 = vmul.f32 0.125, %v284_v39 }
  0x14   : > { %s2241_s23 = scalar_lea.vmem %s2774_s1, %s1944_s20  ;;  %v219_v40 = vfloor.f32 %v217_v32  ;;  %v220_v41 = vmul.f32 64.0, %v218_v33  ;;  %v303_v44 = vmul.f32 8.0, %v295_v36  ;;  %s201_s30 = scalar_lea.vmem %s2775_s2, %s1944_s20 }
  0x15   : > { %v205_v23 = vld [vmem:[%s2241_s23] sm:$0x77]  ;;  %v299_v53 = vfloor.f32 %v291_v45  ;;  %v296_v54 = vfloor.f32 %v288_v46  ;;  %v2266_v55 = vfloor.f32 %v292_v47 }
  0x16   : > { %v237_v28 = vrot.slane %v205_v23, %v2218_v9  ;;  %v241_v29 = vrot.slane %v205_v23, %v240_v10  ;;  %v249_v30 = vrot.slane %v205_v23, %v2224_v11  ;;  %v253_v31 = vrot.slane %v205_v23, %v252_v12 }
  0x17   : > { %v261_v34 = vrot.slane %v205_v23, %v260_v13  ;;  %v265_v35 = vrot.slane %v205_v23, %v264_v14  ;;  %v221_v48 = vmul.f32 64.0, %v219_v40  ;;  %v222_v49 = vsub.f32 %v213_v16, %v220_v41 }
  0x18   : > { %v244_v42 = vadd.f32 %v237_v28, %v218_v33  ;;  %v245_v50 = vadd.f32 %v241_v29, %v219_v40  ;;  %v311_v52 = vsub.f32 %v2231_v17, %v303_v44  ;;  %v307_v60 = vmul.f32 8.0, %v299_v53 }
  0x19   : > { %v223_v56 = vsub.f32 %v214_v24, %v221_v48  ;;  %v225_v57 = vmul.f32 0.125, %v222_v49  ;;  %v304_v62 = vmul.f32 8.0, %v296_v54 }
  0x1a   : > { %v2263_v51 = vrot.slane %v244_v42, %v2218_v9  ;;  %v2269_v58 = vrot.slane %v245_v50, %v2218_v9  ;;  %v315_v4 = vsub.f32 %v283_v37, %v307_v60 }
  0x1b   : > { %v226_v0 = vmul.f32 0.125, %v223_v56  ;;  %v227_v1 = vfloor.f32 %v225_v57  ;;  %v312_v8 = vsub.f32 %v280_v38, %v304_v62 }
  0x1c   : > { %v327_v59 = vsub.f32 %v2263_v51, %v295_v36  ;;  %v335_v61 = vsub.f32 %v2263_v51, %v299_v53  ;;  %v329_v63 = vsub.f32 %v2263_v51, %v296_v54  ;;  %v328_v2 = vsub.f32 %v2269_v58, %v295_v36 }
  0x1d   : > { %v336_v6 = vsub.f32 %v2269_v58, %v299_v53  ;;  %v228_v10 = vfloor.f32 %v226_v0  ;;  %v229_v12 = vmul.f32 8.0, %v227_v1  ;;  %v256_v13 = vadd.f32 %v249_v30, %v227_v1 }
  0x1e   : > { %v343_v3 = vand.u32 2147483647, %v327_v59  ;;  %v351_v7 = vand.u32 2147483647, %v335_v61  ;;  %v344_v14 = vand.u32 2147483647, %v328_v2  ;;  %v330_v20 = vsub.f32 %v2269_v58, %v296_v54 }
  0x1f   : > { %v352_v16 = vand.u32 2147483647, %v336_v6  ;;  %v230_v23 = vmul.f32 8.0, %v228_v10  ;;  %v231_v24 = vsub.f32 %v222_v49, %v229_v12  ;;  %v257_v25 = vadd.f32 %v253_v31, %v228_v10 }
  0x20   : > { %v359_v15 = vsub.f32 1.0, %v343_v3  ;;  %v367_v19 = vsub.f32 1.0, %v351_v7  ;;  %v360_v26 = vsub.f32 1.0, %v344_v14  ;;  %v2278_v29 = vrot.slane %v256_v13, %v2218_v9 }
  0x21   : > { %v368_v32 = vsub.f32 1.0, %v352_v16  ;;  %v232_v36 = vsub.f32 %v223_v56, %v230_v23  ;;  %v268_v37 = vadd.f32 %v261_v34, %v231_v24  ;;  %v2281_v30 = vrot.slane %v257_v25, %v2218_v9 }
  0x22   : > { %v375_v28 = vmax.f32 %v359_v15, 0.0  ;;  %v383_v33 = vmax.f32 %v367_v19, 0.0  ;;  %v376_v38 = vmax.f32 %v360_v26, 0.0  ;;  %v399_v40 = vsub.f32 %v2278_v29, %v311_v52 }
  0x23   : > { %v384_v41 = vmax.f32 %v368_v32, 0.0  ;;  %v407_v42 = vsub.f32 %v2278_v29, %v315_v4  ;;  %v345_v44 = vand.u32 2147483647, %v329_v63  ;;  %v269_v31 = vadd.f32 %v265_v35, %v232_v36 }
  0x24   : > { %v400_v45 = vsub.f32 %v2281_v30, %v311_v52  ;;  %v482_v46 = vrot.slane %v268_v37, %v2218_v9  ;;  %v408_v47 = vsub.f32 %v2281_v30, %v315_v4  ;;  %v415_v48 = vand.u32 2147483647, %v399_v40 }
  0x25   : > { %v423_v49 = vand.u32 2147483647, %v407_v42  ;;  %v346_v34 = vand.u32 2147483647, %v330_v20  ;;  %v401_v50 = vsub.f32 %v2278_v29, %v312_v8  ;;  %v486_v54 = vrot.slane %v269_v31, %v2218_v9 }
  0x26   : > { %v416_v53 = vand.u32 2147483647, %v400_v45  ;;  %v487_v56 = vsub.f32 %v482_v46, %v2231_v17  ;;  %v424_v57 = vand.u32 2147483647, %v408_v47  ;;  %v431_v59 = vsub.f32 1.0, %v415_v48 }
  0x27   : > { %v439_v60 = vsub.f32 1.0, %v423_v49  ;;  %v361_v35 = vsub.f32 1.0, %v345_v44  ;;  %v362_v61 = vsub.f32 1.0, %v346_v34  ;;  %v488_v62 = vsub.f32 %v486_v54, %v2231_v17 }
  0x28   : > { %v432_v52 = vsub.f32 1.0, %v416_v53  ;;  %v489_v63 = vand.u32 2147483647, %v487_v56  ;;  %v440_v0 = vsub.f32 1.0, %v424_v57  ;;  %v447_v1 = vmax.f32 %v431_v59, 0.0 }
  0x29   : > { %v455_v2 = vmax.f32 %v439_v60, 0.0  ;;  %v377_v3 = vmax.f32 %v361_v35, 0.0  ;;  %v2292_v4 = vmax.f32 %v362_v61, 0.0  ;;  %v490_v7 = vand.u32 2147483647, %v488_v62 }
  0x2a   : > { %v448_v6 = vmax.f32 %v432_v52, 0.0  ;;  %v491_v10 = vsub.f32 1.0, %v489_v63  ;;  %v456_v12 = vmax.f32 %v440_v0, 0.0  ;;  %v463_v13 = vmul.f32 %v447_v1, %v375_v28 }
  0x2b   : > { %v471_v14 = vmul.f32 %v455_v2, %v383_v33  ;;  %v402_v15 = vsub.f32 %v2281_v30, %v312_v8  ;;  %v417_v16 = vand.u32 2147483647, %v401_v50  ;;  %v492_v20 = vsub.f32 1.0, %v490_v7 }
  0x2c   : > { %v464_v19 = vmul.f32 %v448_v6, %v376_v38  ;;  %v2295_v23 = vmax.f32 %v491_v10, 0.0  ;;  %v472_v17 = vmul.f32 %v456_v12, %v384_v41  ;;  %v308_v26 = vmul.f32 8.0, %v2266_v55 }
  0x2d   : > { %v418_v24 = vand.u32 2147483647, %v402_v15  ;;  %v433_v25 = vsub.f32 1.0, %v417_v16  ;;  %v337_v32 = vsub.f32 %v2263_v51, %v2266_v55  ;;  %v2300_v36 = vmax.f32 %v492_v20, 0.0 }
  0x2e   : > { %v511_v37 = vcombine.low %v463_v13, %v464_v19  ;;  %v711_v28 = vcombine.low %v471_v14, %v472_v17  ;;  %v512_v33 = vcombine.high %v463_v13, %v464_v19  ;;  %v712_v40 = vcombine.high %v471_v14, %v472_v17 }
  0x2f   : > { %v434_v8 = vsub.f32 1.0, %v418_v24  ;;  %v449_v42 = vmax.f32 %v433_v25, 0.0  ;;  %v2304_v38 = vsub.f32 %v284_v39, %v308_v26  ;;  %v338_v45 = vsub.f32 %v2269_v58, %v2266_v55 }
  0x30   : > { %v519_v41 = vrot.slane %v511_v37, %v2234_v18  ;;  %v719_v44 = vrot.slane %v711_v28, %v2234_v18  ;;  %v526_v31 = vrot.slane %v512_v33, %v2234_v18  ;;  %v2312_v46 = vrot.slane %v712_v40, %v2234_v18 }
  0x31   : > { %v2314_v47 = vmax.f32 %v434_v8, 0.0  ;;  %v2316_v48 = vmul.f32 %v449_v42, %v377_v3  ;;  %v2318_v49 = vand.u32 2147483647, %v337_v32 }
  0x32   : > { %v527_v21 = vcombine.high %v519_v41, %v519_v41  ;;  %v535_v39 = vrot.slane %v519_v41, %v2234_v18  ;;  %v727_v34 = vcombine.high %v719_v44, %v719_v44  ;;  %v735_v50 = vrot.slane %v719_v44, %v2234_v18 }
  0x33   : > { %v528_v53 = vcombine.high %v526_v31, %v526_v31  ;;  %v2323_v54 = vrot.slane %v526_v31, %v2234_v18  ;;  %v728_v55 = vcombine.high %v2312_v46, %v2312_v46  ;;  %v2329_v56 = vrot.slane %v2312_v46, %v2234_v18 }
  0x34   : > { %v549_v57 = vrot.slane %v527_v21, %v2234_v18  ;;  %v918_v59 = vrot.slane %v535_v39, %v2224_v11  ;;  %v749_v60 = vrot.slane %v727_v34, %v2234_v18  ;;  %v1174_v35 = vrot.slane %v735_v50, %v2224_v11 }
  0x35   : > { %v914_v61 = vrot.slane %v535_v39, %v2218_v9  ;;  %v1170_v52 = vrot.slane %v735_v50, %v2218_v9  ;;  %v557_v62 = vcombine.high %v535_v39, %v535_v39  ;;  %v757_v63 = vcombine.high %v735_v50, %v735_v50 }
  0x36   : > { %v926_v0 = vrot.slane %v549_v57, %v2224_v11  ;;  %v1552_v1 = vmul.f32 %v918_v59, %v2300_v36  ;;  %v1182_v2 = vrot.slane %v749_v60, %v2224_v11  ;;  %v1616_v3 = vmul.f32 %v1174_v35, %v2300_v36 }
  0x37   : > { %v922_v6 = vrot.slane %v549_v57, %v2218_v9  ;;  %v1551_v7 = vmul.f32 %v914_v61, %v2295_v23  ;;  %v1178_v10 = vrot.slane %v749_v60, %v2218_v9  ;;  %v1615_v12 = vmul.f32 %v1170_v52, %v2295_v23 }
  0x38   : > { %v1554_v13 = vmul.f32 %v926_v0, %v2300_v36  ;;  %v1618_v14 = vmul.f32 %v1182_v2, %v2300_v36  ;;  %v559_v15 = vcombine.high %v549_v57, %v549_v57  ;;  %v934_v16 = vrot.slane %v557_v62, %v2224_v11 }
  0x39   : > { %v1553_v19 = vmul.f32 %v922_v6, %v2295_v23  ;;  %v1617_v20 = vmul.f32 %v1178_v10, %v2295_v23  ;;  %v759_v17 = vcombine.high %v749_v60, %v749_v60  ;;  %v1190_v24 = vrot.slane %v757_v63, %v2224_v11 }
  0x3a   : > { %v1952_v25 = vpack.c.bf16 %v1554_v13, %v1552_v1  ;;  %v2016_v26 = vpack.c.bf16 %v1618_v14, %v1616_v3  ;;  %v942_v32 = vrot.slane %v559_v15, %v2224_v11  ;;  %v1556_v37 = vmul.f32 %v934_v16, %v2300_v36 }
  0x3b   : > { %v1954_v28 = vpack.c.bf16 %v1553_v19, %v1551_v7  ;;  %v2018_v33 = vpack.c.bf16 %v1617_v20, %v1615_v12  ;;  %v1198_v40 = vrot.slane %v759_v17, %v2224_v11  ;;  %v1620_v8 = vmul.f32 %v1190_v24, %v2300_v36 }
  0x3c   : > { %1953 = vmatprep.subr.bf16.mxu1 %v1952_v25  ;;  %2017 = vmatprep.subr.bf16.mxu0 %v2016_v26  ;;  %v1558_v42 = vmul.f32 %v942_v32, %v2300_v36  ;;  %v930_v41 = vrot.slane %v557_v62, %v2218_v9  ;;  %v938_v44 = vrot.slane %v559_v15, %v2218_v9  ;;  %v2358_v31 = vand.u32 2147483647, %v338_v45 }
  0x3d   : > { %1955 = vmatpush1.bf16.msra.mxu1 %v1954_v28  ;;  %2019 = vmatpush1.bf16.msra.mxu0 %v2018_v33  ;;  %v1622_v46 = vmul.f32 %v1198_v40, %v2300_v36  ;;  %v1186_v21 = vrot.slane %v757_v63, %v2218_v9  ;;  %v1194_v39 = vrot.slane %v759_v17, %v2218_v9  ;;  %v369_v34 = vsub.f32 1.0, %v2318_v49 }
  0x3e   : > { %v1956_v50 = vpack.c.bf16 %v1558_v42, %v1556_v37  ;;  %v1555_v57 = vmul.f32 %v930_v41, %v2295_v23  ;;  %v1557_v59 = vmul.f32 %v938_v44, %v2295_v23  ;;  %v556_v60 = vrot.slane %v528_v53, %v2234_v18 }
  0x3f   : > { %v2020_v35 = vpack.c.bf16 %v1622_v46, %v1620_v8  ;;  %v1619_v45 = vmul.f32 %v1186_v21, %v2295_v23  ;;  %v1621_v61 = vmul.f32 %v1194_v39, %v2295_v23  ;;  %v950_v52 = vrot.slane %v2323_v54, %v2224_v11 }
  0x40   : > { %1957 = vmatprep.subr.bf16.mxu1 %v1956_v50  ;;  %v1958_v62 = vpack.c.bf16 %v1557_v59, %v1555_v57  ;;  %v958_v63 = vrot.slane %v556_v60, %v2224_v11  ;;  %v756_v0 = vrot.slane %v728_v55, %v2234_v18  ;;  %v1206_v1 = vrot.slane %v2329_v56, %v2224_v11 }
  0x41   : > { %2021 = vmatprep.subr.bf16.mxu0 %v2020_v35  ;;  %v2022_v2 = vpack.c.bf16 %v1621_v61, %v1619_v45  ;;  %v1560_v53 = vmul.f32 %v950_v52, %v2300_v36  ;;  %v946_v3 = vrot.slane %v2323_v54, %v2218_v9  ;;  %v954_v6 = vrot.slane %v556_v60, %v2218_v9 }
  0x42   : > { %1959 = vmatpush1.bf16.msra.mxu1 %v1958_v62  ;;  %v1562_v7 = vmul.f32 %v958_v63, %v2300_v36  ;;  %v1214_v10 = vrot.slane %v756_v0, %v2224_v11  ;;  %v1624_v12 = vmul.f32 %v1206_v1, %v2300_v36  ;;  %v1202_v55 = vrot.slane %v2329_v56, %v2218_v9 }
  0x43   : > { %2023 = vmatpush1.bf16.msra.mxu0 %v2022_v2  ;;  %v1559_v13 = vmul.f32 %v946_v3, %v2295_v23  ;;  %v1561_v14 = vmul.f32 %v954_v6, %v2295_v23  ;;  %v1210_v15 = vrot.slane %v756_v0, %v2218_v9  ;;  %v558_v16 = vcombine.high %v2323_v54, %v2323_v54 }
  0x44   : > { %v1960_v19 = vpack.c.bf16 %v1562_v7, %v1560_v53  ;;  %v1626_v20 = vmul.f32 %v1214_v10, %v2300_v36  ;;  %v1623_v17 = vmul.f32 %v1202_v55, %v2295_v23  ;;  %v560_v24 = vcombine.high %v556_v60, %v556_v60 }
  0x45   : > { %v1962_v25 = vpack.c.bf16 %v1561_v14, %v1559_v13  ;;  %v1625_v26 = vmul.f32 %v1210_v15, %v2295_v23  ;;  %v966_v32 = vrot.slane %v558_v16, %v2224_v11  ;;  %v758_v37 = vcombine.high %v2329_v56, %v2329_v56 }
  0x46   : > { %1961 = vmatprep.subr.bf16.mxu1 %v1960_v19  ;;  %v2024_v28 = vpack.c.bf16 %v1626_v20, %v1624_v12  ;;  %v974_v33 = vrot.slane %v560_v24, %v2224_v11  ;;  %v760_v40 = vcombine.high %v756_v0, %v756_v0  ;;  %v962_v54 = vrot.slane %v558_v16, %v2218_v9 }
  0x47   : > { %1963 = vmatpush1.bf16.msra.mxu1 %v1962_v25  ;;  %v2026_v8 = vpack.c.bf16 %v1625_v26, %v1623_v17  ;;  %v1564_v42 = vmul.f32 %v966_v32, %v2300_v36  ;;  %v1222_v41 = vrot.slane %v758_v37, %v2224_v11  ;;  %v970_v44 = vrot.slane %v560_v24, %v2218_v9 }
  0x48   : > { %2025 = vmatprep.subr.bf16.mxu0 %v2024_v28  ;;  %v1566_v46 = vmul.f32 %v974_v33, %v2300_v36  ;;  %v1230_v56 = vrot.slane %v760_v40, %v2224_v11  ;;  %v1563_v21 = vmul.f32 %v962_v54, %v2295_v23  ;;  %v1218_v39 = vrot.slane %v758_v37, %v2218_v9 }
  0x49   : > { %2027 = vmatpush1.bf16.msra.mxu0 %v2026_v8  ;;  %v1628_v50 = vmul.f32 %v1222_v41, %v2300_v36  ;;  %v1565_v57 = vmul.f32 %v970_v44, %v2295_v23  ;;  %v1226_v59 = vrot.slane %v760_v40, %v2218_v9  ;;  %v466_v60 = vmul.f32 %v2314_v47, %v2292_v4 }
  0x4a   : > { %v1964_v35 = vpack.c.bf16 %v1566_v46, %v1564_v42  ;;  %v1630_v45 = vmul.f32 %v1230_v56, %v2300_v36  ;;  %v1627_v61 = vmul.f32 %v1218_v39, %v2295_v23  ;;  %v370_v52 = vsub.f32 1.0, %v2358_v31 }
  0x4b   : > { %v1966_v62 = vpack.c.bf16 %v1565_v57, %v1563_v21  ;;  %v1629_v63 = vmul.f32 %v1226_v59, %v2295_v23  ;;  %v561_v0 = vcombine.low %v2316_v48, %v466_v60  ;;  %v385_v1 = vmax.f32 %v369_v34, 0.0 }
  0x4c   : > { %1965 = vmatprep.subr.bf16.mxu1 %v1964_v35  ;;  %v2028_v2 = vpack.c.bf16 %v1630_v45, %v1628_v50  ;;  %v386_v53 = vmax.f32 %v370_v52, 0.0  ;;  %v409_v4 = vsub.f32 %v2278_v29, %v2304_v38  ;;  %v410_v47 = vsub.f32 %v2281_v30, %v2304_v38 }
  0x4d   : > { %1967 = vmatpush1.bf16.msra.mxu1 %v1966_v62  ;;  %v2030_v3 = vpack.c.bf16 %v1629_v63, %v1627_v61  ;;  %v569_v31 = vrot.slane %v561_v0, %v2234_v18  ;;  %v562_v6 = vcombine.high %v2316_v48, %v466_v60  ;;  %v289_v7 = vmul.f32 0.125, %v281_v43 }
  0x4e   : > { %2029 = vmatprep.subr.bf16.mxu0 %v2028_v2  ;;  %v425_v49 = vand.u32 2147483647, %v409_v4  ;;  %v426_v34 = vand.u32 2147483647, %v410_v47  ;;  %v285_v10 = vcvt.s32.f32 %v2254_v27  ;;  %v2426_v12 = vadd.s32 24, %v2214_v5 }
  0x4f   : > { %2031 = vmatpush1.bf16.msra.mxu0 %v2030_v3  ;;  %v577_v55 = vcombine.high %v569_v31, %v569_v31  ;;  %v585_v38 = vrot.slane %v569_v31, %v2234_v18  ;;  %v576_v13 = vrot.slane %v562_v6, %v2234_v18  ;;  %v2430_v14 = vfloor.f32 %v289_v7 }
  0x50   : > { %v441_v48 = vsub.f32 1.0, %v425_v49  ;;  %v442_v15 = vsub.f32 1.0, %v426_v34  ;;  %v2434_v16 = vmul.f32 0.125, %v285_v10  ;;  %v282_v19 = vcvt.s32.f32 %v2426_v12 }
  0x51   : > { %v599_v20 = vrot.slane %v577_v55, %v2234_v18  ;;  %v982_v17 = vrot.slane %v585_v38, %v2224_v11  ;;  %v978_v24 = vrot.slane %v585_v38, %v2218_v9  ;;  %v607_v25 = vcombine.high %v585_v38, %v585_v38 }
  0x52   : > { %v457_v26 = vmax.f32 %v441_v48, 0.0  ;;  %v458_v32 = vmax.f32 %v442_v15, 0.0  ;;  %v578_v37 = vcombine.high %v576_v13, %v576_v13  ;;  %v2441_v28 = vrot.slane %v576_v13, %v2234_v18 }
  0x53   : > { %v990_v33 = vrot.slane %v599_v20, %v2224_v11  ;;  %v1568_v40 = vmul.f32 %v982_v17, %v2300_v36  ;;  %v986_v54 = vrot.slane %v599_v20, %v2218_v9  ;;  %v1567_v8 = vmul.f32 %v978_v24, %v2295_v23 }
  0x54   : > { %v473_v42 = vmul.f32 %v457_v26, %v385_v1  ;;  %v474_v41 = vmul.f32 %v458_v32, %v386_v53  ;;  %v609_v44 = vcombine.high %v599_v20, %v599_v20  ;;  %v998_v46 = vrot.slane %v607_v25, %v2224_v11 }
  0x55   : > { %v1570_v56 = vmul.f32 %v990_v33, %v2300_v36  ;;  %v1569_v21 = vmul.f32 %v986_v54, %v2295_v23  ;;  %v994_v39 = vrot.slane %v607_v25, %v2218_v9  ;;  %v2452_v50 = vrot.slane %v578_v37, %v2234_v18 }
  0x56   : > { %v761_v57 = vcombine.low %v473_v42, %v474_v41  ;;  %v1006_v59 = vrot.slane %v609_v44, %v2224_v11  ;;  %v1572_v60 = vmul.f32 %v998_v46, %v2300_v36  ;;  %v1002_v35 = vrot.slane %v609_v44, %v2218_v9 }
  0x57   : > { %v1968_v45 = vpack.c.bf16 %v1570_v56, %v1568_v40  ;;  %v1970_v61 = vpack.c.bf16 %v1569_v21, %v1567_v8  ;;  %v1571_v52 = vmul.f32 %v994_v39, %v2295_v23  ;;  %v1014_v62 = vrot.slane %v2441_v28, %v2224_v11 }
  0x58   : > { %v769_v63 = vrot.slane %v761_v57, %v2234_v18  ;;  %v1574_v0 = vmul.f32 %v1006_v59, %v2300_v36  ;;  %v1573_v1 = vmul.f32 %v1002_v35, %v2295_v23  ;;  %v1022_v2 = vrot.slane %v2452_v50, %v2224_v11 }
  0x59   : > { %1969 = vmatprep.subr.bf16.mxu1 %v1968_v45  ;;  %v1576_v53 = vmul.f32 %v1014_v62, %v2300_v36  ;;  %v762_v4 = vcombine.high %v473_v42, %v474_v41  ;;  %v1010_v47 = vrot.slane %v2441_v28, %v2218_v9  ;;  %v1018_v3 = vrot.slane %v2452_v50, %v2218_v9 }
  0x5a   : > { %v777_v31 = vcombine.high %v769_v63, %v769_v63  ;;  %v785_v6 = vrot.slane %v769_v63, %v2234_v18  ;;  %1971 = vmatpush1.bf16.msra.mxu1 %v1970_v61  ;;  %v1972_v7 = vpack.c.bf16 %v1574_v0, %v1572_v60  ;;  %v1974_v49 = vpack.c.bf16 %v1573_v1, %v1571_v52 }
  0x5b   : > { %v1578_v34 = vmul.f32 %v1022_v2, %v2300_v36  ;;  %v776_v55 = vrot.slane %v762_v4, %v2234_v18  ;;  %v1575_v38 = vmul.f32 %v1010_v47, %v2295_v23  ;;  %v1577_v13 = vmul.f32 %v1018_v3, %v2295_v23 }
  0x5c   : > { %v799_v48 = vrot.slane %v777_v31, %v2234_v18  ;;  %v1238_v15 = vrot.slane %v785_v6, %v2224_v11  ;;  %v1234_v20 = vrot.slane %v785_v6, %v2218_v9  ;;  %1973 = vmatprep.subr.bf16.mxu1 %v1972_v7  ;;  %v807_v17 = vcombine.high %v785_v6, %v785_v6 }
  0x5d   : > { %v1976_v24 = vpack.c.bf16 %v1578_v34, %v1576_v53  ;;  %v778_v25 = vcombine.high %v776_v55, %v776_v55  ;;  %v792_v26 = vrot.slane %v776_v55, %v2234_v18  ;;  %v1978_v32 = vpack.c.bf16 %v1577_v13, %v1575_v38 }
  0x5e   : > { %v1246_v37 = vrot.slane %v799_v48, %v2224_v11  ;;  %v1632_v33 = vmul.f32 %v1238_v15, %v2300_v36  ;;  %v1242_v40 = vrot.slane %v799_v48, %v2218_v9  ;;  %v1631_v54 = vmul.f32 %v1234_v20, %v2295_v23  ;;  %1975 = vmatpush1.bf16.msra.mxu1 %v1974_v49 }
  0x5f   : > { %v809_v8 = vcombine.high %v799_v48, %v799_v48  ;;  %v1254_v42 = vrot.slane %v807_v17, %v2224_v11  ;;  %v1250_v41 = vrot.slane %v807_v17, %v2218_v9  ;;  %1977 = vmatprep.subr.bf16.mxu1 %v1976_v24  ;;  %v806_v44 = vrot.slane %v778_v25, %v2234_v18 }
  0x60   : > { %v1634_v46 = vmul.f32 %v1246_v37, %v2300_v36  ;;  %v1633_v56 = vmul.f32 %v1242_v40, %v2295_v23  ;;  %v1270_v21 = vrot.slane %v792_v26, %v2224_v11  ;;  %v1266_v39 = vrot.slane %v792_v26, %v2218_v9 }
  0x61   : > { %v1262_v57 = vrot.slane %v809_v8, %v2224_v11  ;;  %v1636_v59 = vmul.f32 %v1254_v42, %v2300_v36  ;;  %v1258_v60 = vrot.slane %v809_v8, %v2218_v9  ;;  %v1635_v35 = vmul.f32 %v1250_v41, %v2295_v23  ;;  %v2531_v41 = vld [vmem:[%s2516_s27] sm:$0x77] }
  0x62   : > { %v2032_v45 = vpack.c.bf16 %v1634_v46, %v1632_v33  ;;  %v2034_v61 = vpack.c.bf16 %v1633_v56, %v1631_v54  ;;  %v1278_v52 = vrot.slane %v806_v44, %v2224_v11  ;;  %v1640_v62 = vmul.f32 %v1270_v21, %v2300_v36  ;;  %1979 = vmatpush1.bf16.msra.mxu1 %v1978_v32 }
  0x63   : > { %v1638_v63 = vmul.f32 %v1262_v57, %v2300_v36  ;;  %v1637_v0 = vmul.f32 %v1258_v60, %v2295_v23  ;;  %v1274_v1 = vrot.slane %v806_v44, %v2218_v9  ;;  %v1639_v2 = vmul.f32 %v1266_v39, %v2295_v23 }
  0x64   : > { %2033 = vmatprep.subr.bf16.mxu0 %v2032_v45  ;;  %v1642_v53 = vmul.f32 %v1278_v52, %v2300_v36  ;;  %v608_v4 = vcombine.high %v2441_v28, %v2441_v28  ;;  %v610_v47 = vcombine.high %v2452_v50, %v2452_v50  ;;  %v808_v3 = vcombine.high %v792_v26, %v792_v26 }
  0x65   : > { %2035 = vmatpush1.bf16.msra.mxu0 %v2034_v61  ;;  %v2036_v31 = vpack.c.bf16 %v1638_v63, %v1636_v59  ;;  %v2038_v6 = vpack.c.bf16 %v1637_v0, %v1635_v35  ;;  %v1641_v7 = vmul.f32 %v1274_v1, %v2295_v23  ;;  %v810_v49 = vcombine.high %v806_v44, %v806_v44 }
  0x66   : > { %v2040_v34 = vpack.c.bf16 %v1642_v53, %v1640_v62  ;;  %v1030_v55 = vrot.slane %v608_v4, %v2224_v11  ;;  %v1038_v38 = vrot.slane %v610_v47, %v2224_v11  ;;  %v1286_v13 = vrot.slane %v808_v3, %v2224_v11 }
  0x67   : > { %2037 = vmatprep.subr.bf16.mxu0 %v2036_v31  ;;  %v2042_v28 = vpack.c.bf16 %v1641_v7, %v1639_v2  ;;  %v1294_v48 = vrot.slane %v810_v49, %v2224_v11  ;;  %v1026_v50 = vrot.slane %v608_v4, %v2218_v9  ;;  %v1034_v15 = vrot.slane %v610_v47, %v2218_v9 }
  0x68   : > { %v1580_v20 = vmul.f32 %v1030_v55, %v2300_v36  ;;  %v1582_v17 = vmul.f32 %v1038_v38, %v2300_v36  ;;  %v1644_v24 = vmul.f32 %v1286_v13, %v2300_v36  ;;  %v1282_v25 = vrot.slane %v808_v3, %v2218_v9 }
  0x69   : > { %2039 = vmatpush1.bf16.msra.mxu0 %v2038_v6  ;;  %v1646_v26 = vmul.f32 %v1294_v48, %v2300_v36  ;;  %v1579_v32 = vmul.f32 %v1026_v50, %v2295_v23  ;;  %v1581_v37 = vmul.f32 %v1034_v15, %v2295_v23  ;;  %v1290_v33 = vrot.slane %v810_v49, %v2218_v9 }
  0x6a   : > { %2041 = vmatprep.subr.bf16.mxu0 %v2040_v34  ;;  %v1980_v40 = vpack.c.bf16 %v1582_v17, %v1580_v20  ;;  %v1643_v54 = vmul.f32 %v1282_v25, %v2295_v23  ;;  %v305_v8 = vmul.f32 8.0, %v2430_v14  ;;  %v331_v42 = vsub.f32 %v2263_v51, %v2430_v14 }
  0x6b   : > { %v2044_v44 = vpack.c.bf16 %v1646_v26, %v1644_v24  ;;  %v1982_v46 = vpack.c.bf16 %v1581_v37, %v1579_v32  ;;  %v1645_v56 = vmul.f32 %v1290_v33, %v2295_v23  ;;  %v332_v21 = vsub.f32 %v2269_v58, %v2430_v14 }
  0x6c   : > { %1981 = vmatprep.subr.bf16.mxu1 %v1980_v40  ;;  %v313_v39 = vsub.f32 %v281_v43, %v305_v8  ;;  %v347_v57 = vand.u32 2147483647, %v331_v42  ;;  %v301_v59 = vfloor.f32 %v2434_v16  ;;  %v290_v60 = vmul.f32 0.125, %v282_v19 }
  0x6d   : > { %2043 = vmatpush1.bf16.msra.mxu0 %v2042_v28  ;;  %1983 = vmatpush1.bf16.msra.mxu1 %v1982_v46  ;;  %v2046_v35 = vpack.c.bf16 %v1645_v56, %v1643_v54  ;;  %v348_v45 = vand.u32 2147483647, %v332_v21  ;;  %v2542_v61 = vadd.s32 56, %v2214_v5  ;;  %v1681_v14 = vcombine.high %v2531_v41, %v2531_v41 }
  0x6e   : > { %2045 = vmatprep.subr.bf16.mxu0 %v2044_v44  ;;  %v363_v52 = vsub.f32 1.0, %v347_v57  ;;  %v403_v22 = vsub.f32 %v2278_v29, %v313_v39  ;;  %v404_v43 = vsub.f32 %v2281_v30, %v313_v39  ;;  %v309_v16 = vmul.f32 8.0, %v301_v59 }
  0x6f   : > { %v364_v62 = vsub.f32 1.0, %v348_v45  ;;  %v339_v63 = vsub.f32 %v2263_v51, %v301_v59  ;;  %v340_v0 = vsub.f32 %v2269_v58, %v301_v59  ;;  %v298_v1 = vfloor.f32 %v290_v60  ;;  %1749 = vmatprep.mubr.f32.mxu1 %v1681_v14 }
  0x70   : > { %v379_v2 = vmax.f32 %v363_v52, 0.0  ;;  %v419_v5 = vand.u32 2147483647, %v403_v22  ;;  %v420_v53 = vand.u32 2147483647, %v404_v43  ;;  %v317_v4 = vsub.f32 %v285_v10, %v309_v16 }
  0x71   : > { %2047 = vmatpush1.bf16.msra.mxu0 %v2046_v35  ;;  %v380_v47 = vmax.f32 %v364_v62, 0.0  ;;  %v355_v3 = vand.u32 2147483647, %v339_v63  ;;  %v356_v31 = vand.u32 2147483647, %v340_v0  ;;  %v306_v6 = vmul.f32 8.0, %v298_v1 }
  0x72   : > { %v435_v7 = vsub.f32 1.0, %v419_v5  ;;  %v436_v49 = vsub.f32 1.0, %v420_v53  ;;  %v411_v34 = vsub.f32 %v2278_v29, %v317_v4  ;;  %v412_v55 = vsub.f32 %v2281_v30, %v317_v4 }
  0x73   : > { %v371_v38 = vsub.f32 1.0, %v355_v3  ;;  %v372_v13 = vsub.f32 1.0, %v356_v31  ;;  %v314_v28 = vsub.f32 %v282_v19, %v306_v6  ;;  %v333_v48 = vsub.f32 %v2263_v51, %v298_v1 }
  0x74   : > { %v451_v27 = vmax.f32 %v435_v7, 0.0  ;;  %v452_v10 = vmax.f32 %v436_v49, 0.0  ;;  %v427_v50 = vand.u32 2147483647, %v411_v34  ;;  %v428_v15 = vand.u32 2147483647, %v412_v55 }
  0x75   : > { %v387_v20 = vmax.f32 %v371_v38, 0.0  ;;  %v388_v17 = vmax.f32 %v372_v13, 0.0  ;;  %v334_v24 = vsub.f32 %v2269_v58, %v298_v1  ;;  %v349_v25 = vand.u32 2147483647, %v333_v48 }
  0x76   : > { %v467_v26 = vmul.f32 %v451_v27, %v379_v2  ;;  %v468_v32 = vmul.f32 %v452_v10, %v380_v47  ;;  %v443_v37 = vsub.f32 1.0, %v427_v50  ;;  %v444_v33 = vsub.f32 1.0, %v428_v15 }
  0x77   : > { %v350_v40 = vand.u32 2147483647, %v334_v24  ;;  %v365_v54 = vsub.f32 1.0, %v349_v25  ;;  %v405_v12 = vsub.f32 %v2278_v29, %v314_v28  ;;  %v406_v19 = vsub.f32 %v2281_v30, %v314_v28 }
  0x78   : > { %v611_v8 = vcombine.low %v467_v26, %v468_v32  ;;  %v459_v42 = vmax.f32 %v443_v37, 0.0  ;;  %v460_v44 = vmax.f32 %v444_v33, 0.0  ;;  %v612_v46 = vcombine.high %v467_v26, %v468_v32 }
  0x79   : > { %v366_v56 = vsub.f32 1.0, %v350_v40  ;;  %v2560_v21 = vmax.f32 %v365_v54, 0.0  ;;  %v421_v39 = vand.u32 2147483647, %v405_v12  ;;  %v422_v57 = vand.u32 2147483647, %v406_v19 }
  0x7a   : > { %v619_v59 = vrot.slane %v611_v8, %v2234_v18  ;;  %v475_v60 = vmul.f32 %v459_v42, %v387_v20  ;;  %v476_v35 = vmul.f32 %v460_v44, %v388_v17  ;;  %v626_v45 = vrot.slane %v612_v46, %v2234_v18 }
  0x7b   : > { %v2564_v14 = vmax.f32 %v366_v56, 0.0  ;;  %v437_v52 = vsub.f32 1.0, %v421_v39  ;;  %v438_v22 = vsub.f32 1.0, %v422_v57  ;;  %v286_v43 = vcvt.s32.f32 %v2542_v61 }
  0x7c   : > { %v627_v16 = vcombine.high %v619_v59, %v619_v59  ;;  %v635_v62 = vrot.slane %v619_v59, %v2234_v18  ;;  %v811_v63 = vcombine.low %v475_v60, %v476_v35  ;;  %v628_v0 = vcombine.high %v626_v45, %v626_v45 }
  0x7d   : > { %v2569_v1 = vrot.slane %v626_v45, %v2234_v18  ;;  %v812_v2 = vcombine.high %v475_v60, %v476_v35  ;;  %v2571_v5 = vmax.f32 %v437_v52, 0.0  ;;  %v2573_v53 = vmax.f32 %v438_v22, 0.0 }
  0x7e   : > { %v649_v4 = vrot.slane %v627_v16, %v2234_v18  ;;  %v1046_v47 = vrot.slane %v635_v62, %v2224_v11  ;;  %v819_v3 = vrot.slane %v811_v63, %v2234_v18  ;;  %v1042_v31 = vrot.slane %v635_v62, %v2218_v9 }
  0x7f   : > { %v657_v6 = vcombine.high %v635_v62, %v635_v62  ;;  %v2580_v7 = vrot.slane %v628_v0, %v2234_v18  ;;  %v1078_v49 = vrot.slane %v2569_v1, %v2224_v11  ;;  %v826_v34 = vrot.slane %v812_v2, %v2234_v18 }
  0x80   : > { %v1054_v55 = vrot.slane %v649_v4, %v2224_v11  ;;  %v1584_v38 = vmul.f32 %v1046_v47, %v2300_v36  ;;  %v827_v13 = vcombine.high %v819_v3, %v819_v3  ;;  %v835_v28 = vrot.slane %v819_v3, %v2234_v18 }
  0x81   : > { %v1050_v48 = vrot.slane %v649_v4, %v2218_v9  ;;  %v1583_v27 = vmul.f32 %v1042_v31, %v2295_v23  ;;  %v659_v10 = vcombine.high %v649_v4, %v649_v4  ;;  %v1062_v50 = vrot.slane %v657_v6, %v2224_v11 }
  0x82   : > { %v1586_v15 = vmul.f32 %v1054_v55, %v2300_v36  ;;  %v849_v20 = vrot.slane %v827_v13, %v2234_v18  ;;  %v1302_v17 = vrot.slane %v835_v28, %v2224_v11  ;;  %v1298_v24 = vrot.slane %v835_v28, %v2218_v9 }
  0x83   : > { %v1585_v25 = vmul.f32 %v1050_v48, %v2295_v23  ;;  %v1070_v26 = vrot.slane %v659_v10, %v2224_v11  ;;  %v1588_v32 = vmul.f32 %v1062_v50, %v2300_v36  ;;  %v857_v37 = vcombine.high %v835_v28, %v835_v28 }
  0x84   : > { %v1984_v33 = vpack.c.bf16 %v1586_v15, %v1584_v38  ;;  %v1310_v40 = vrot.slane %v849_v20, %v2224_v11  ;;  %v1648_v54 = vmul.f32 %v1302_v17, %v2300_v36  ;;  %v1306_v12 = vrot.slane %v849_v20, %v2218_v9 }
  0x85   : > { %v1986_v19 = vpack.c.bf16 %v1585_v25, %v1583_v27  ;;  %v1647_v8 = vmul.f32 %v1298_v24, %v2295_v23  ;;  %v1590_v42 = vmul.f32 %v1070_v26, %v2300_v36  ;;  %v859_v44 = vcombine.high %v849_v20, %v849_v20 }
  0x86   : > { %1985 = vmatprep.subr.bf16.mxu1 %v1984_v33  ;;  %v1650_v46 = vmul.f32 %v1310_v40, %v2300_v36  ;;  %v1649_v56 = vmul.f32 %v1306_v12, %v2295_v23  ;;  %v1318_v39 = vrot.slane %v857_v37, %v2224_v11  ;;  %v1058_v57 = vrot.slane %v657_v6, %v2218_v9 }
  0x87   : > { %1987 = vmatpush1.bf16.msra.mxu1 %v1986_v19  ;;  %v1988_v59 = vpack.c.bf16 %v1590_v42, %v1588_v32  ;;  %v1326_v60 = vrot.slane %v859_v44, %v2224_v11  ;;  %v1066_v35 = vrot.slane %v659_v10, %v2218_v9  ;;  %v1314_v45 = vrot.slane %v857_v37, %v2218_v9 }
  0x88   : > { %v2048_v52 = vpack.c.bf16 %v1650_v46, %v1648_v54  ;;  %v2050_v22 = vpack.c.bf16 %v1649_v56, %v1647_v8  ;;  %v1652_v16 = vmul.f32 %v1318_v39, %v2300_v36  ;;  %v1587_v62 = vmul.f32 %v1058_v57, %v2295_v23 }
  0x89   : > { %1989 = vmatprep.subr.bf16.mxu1 %v1988_v59  ;;  %v1654_v63 = vmul.f32 %v1326_v60, %v2300_v36  ;;  %v1589_v0 = vmul.f32 %v1066_v35, %v2295_v23  ;;  %v1322_v2 = vrot.slane %v859_v44, %v2218_v9  ;;  %v1651_v4 = vmul.f32 %v1314_v45, %v2295_v23 }
  0x8a   : > { %2049 = vmatprep.subr.bf16.mxu0 %v2048_v52  ;;  %v1086_v47 = vrot.slane %v2580_v7, %v2224_v11  ;;  %v1592_v3 = vmul.f32 %v1078_v49, %v2300_v36  ;;  %v828_v31 = vcombine.high %v826_v34, %v826_v34  ;;  %v842_v6 = vrot.slane %v826_v34, %v2234_v18 }
  0x8b   : > { %2051 = vmatpush1.bf16.msra.mxu0 %v2050_v22  ;;  %v2052_v55 = vpack.c.bf16 %v1654_v63, %v1652_v16  ;;  %v1990_v38 = vpack.c.bf16 %v1589_v0, %v1587_v62  ;;  %v1653_v13 = vmul.f32 %v1322_v2, %v2295_v23  ;;  %v1074_v28 = vrot.slane %v2569_v1, %v2218_v9  ;;  %v2657_v63 = vld [vmem:[%s2516_s27 + $0x8] sm:$0x77] }
  0x8c   : > { %v1594_v48 = vmul.f32 %v1086_v47, %v2300_v36  ;;  %v856_v27 = vrot.slane %v828_v31, %v2234_v18  ;;  %v1334_v10 = vrot.slane %v842_v6, %v2224_v11  ;;  %v1082_v49 = vrot.slane %v2580_v7, %v2218_v9 }
  0x8d   : > { %2053 = vmatprep.subr.bf16.mxu0 %v2052_v55  ;;  %1991 = vmatpush1.bf16.msra.mxu1 %v1990_v38  ;;  %v2054_v34 = vpack.c.bf16 %v1653_v13, %v1651_v4  ;;  %v1591_v50 = vmul.f32 %v1074_v28, %v2295_v23  ;;  %v1330_v15 = vrot.slane %v842_v6, %v2218_v9  ;;  %v294_v20 = vmul.f32 0.125, %v286_v43 }
  0x8e   : > { %v1992_v17 = vpack.c.bf16 %v1594_v48, %v1592_v3  ;;  %v1342_v24 = vrot.slane %v856_v27, %v2224_v11  ;;  %v1656_v25 = vmul.f32 %v1334_v10, %v2300_v36  ;;  %v1593_v26 = vmul.f32 %v1082_v49, %v2295_v23 }
  0x8f   : > { %2055 = vmatpush1.bf16.msra.mxu0 %v2054_v34  ;;  %v1338_v32 = vrot.slane %v856_v27, %v2218_v9  ;;  %v1655_v37 = vmul.f32 %v1330_v15, %v2295_v23  ;;  %v658_v33 = vcombine.high %v2569_v1, %v2569_v1  ;;  %v660_v40 = vcombine.high %v2580_v7, %v2580_v7 }
  0x90   : > { %1993 = vmatprep.subr.bf16.mxu1 %v1992_v17  ;;  %v1658_v54 = vmul.f32 %v1342_v24, %v2300_v36  ;;  %v1994_v12 = vpack.c.bf16 %v1593_v26, %v1591_v50  ;;  %v858_v19 = vcombine.high %v842_v6, %v842_v6  ;;  %v860_v8 = vcombine.high %v856_v27, %v856_v27 }
  0x91   : > { %v1657_v42 = vmul.f32 %v1338_v32, %v2295_v23  ;;  %v1094_v44 = vrot.slane %v658_v33, %v2224_v11  ;;  %v1102_v46 = vrot.slane %v660_v40, %v2224_v11  ;;  %v1090_v56 = vrot.slane %v658_v33, %v2218_v9 }
  0x92   : > { %v2056_v39 = vpack.c.bf16 %v1658_v54, %v1656_v25  ;;  %1995 = vmatpush1.bf16.msra.mxu1 %v1994_v12  ;;  %v1350_v1 = vrot.slane %v858_v19, %v2224_v11  ;;  %v1358_v7 = vrot.slane %v860_v8, %v2224_v11  ;;  %v1098_v57 = vrot.slane %v660_v40, %v2218_v9 }
  0x93   : > { %v2058_v59 = vpack.c.bf16 %v1657_v42, %v1655_v37  ;;  %v1596_v60 = vmul.f32 %v1094_v44, %v2300_v36  ;;  %v1598_v35 = vmul.f32 %v1102_v46, %v2300_v36  ;;  %v1595_v45 = vmul.f32 %v1090_v56, %v2295_v23 }
  0x94   : > { %2057 = vmatprep.subr.bf16.mxu0 %v2056_v39  ;;  %v1660_v52 = vmul.f32 %v1350_v1, %v2300_v36  ;;  %v1662_v22 = vmul.f32 %v1358_v7, %v2300_v36  ;;  %v1597_v16 = vmul.f32 %v1098_v57, %v2295_v23  ;;  %v1346_v62 = vrot.slane %v858_v19, %v2218_v9 }
  0x95   : > { %2059 = vmatpush1.bf16.msra.mxu0 %v2058_v59  ;;  %v1996_v0 = vpack.c.bf16 %v1598_v35, %v1596_v60  ;;  %v1354_v2 = vrot.slane %v860_v8, %v2218_v9  ;;  %v469_v4 = vmul.f32 %v2571_v5, %v2560_v21  ;;  %v470_v47 = vmul.f32 %v2573_v53, %v2564_v14 }
  0x96   : > { %v2060_v3 = vpack.c.bf16 %v1662_v22, %v1660_v52  ;;  %v1998_v31 = vpack.c.bf16 %v1597_v16, %v1595_v45  ;;  %v1659_v6 = vmul.f32 %v1346_v62, %v2295_v23  ;;  %v302_v55 = vfloor.f32 %v294_v20 }
  0x97   : > { %1997 = vmatprep.subr.bf16.mxu1 %v1996_v0  ;;  %v1661_v38 = vmul.f32 %v1354_v2, %v2295_v23  ;;  %v661_v13 = vcombine.low %v469_v4, %v470_v47  ;;  %v662_v28 = vcombine.high %v469_v4, %v470_v47  ;;  %v1682_v48 = vcombine.high %v2657_v63, %v2657_v63 }
  0x98   : > { %2061 = vmatprep.subr.bf16.mxu0 %v2060_v3  ;;  %1999 = vmatpush1.bf16.msra.mxu1 %v1998_v31  ;;  %v310_v27 = vmul.f32 8.0, %v302_v55  ;;  %v341_v21 = vsub.f32 %v2263_v51, %v302_v55  ;;  %v342_v14 = vsub.f32 %v2269_v58, %v302_v55 }
  0x99   : > { %v2062_v5 = vpack.c.bf16 %v1661_v38, %v1659_v6  ;;  %v669_v53 = vrot.slane %v661_v13, %v2234_v18  ;;  %v676_v10 = vrot.slane %v662_v28, %v2234_v18  ;;  %1820 = vmatprep.mubr.f32.mxu0 %v1682_v48 }
  0x9a   : > { %v318_v49 = vsub.f32 %v286_v43, %v310_v27  ;;  %v357_v34 = vand.u32 2147483647, %v341_v21  ;;  %v358_v50 = vand.u32 2147483647, %v342_v14 }
  0x9b   : > { %2063 = vmatpush1.bf16.msra.mxu0 %v2062_v5  ;;  %v677_v15 = vcombine.high %v669_v53, %v669_v53  ;;  %v685_v20 = vrot.slane %v669_v53, %v2234_v18  ;;  %v678_v17 = vcombine.high %v676_v10, %v676_v10  ;;  %v692_v51 = vrot.slane %v676_v10, %v2234_v18 }
  0x9c   : > { %v373_v24 = vsub.f32 1.0, %v357_v34  ;;  %v374_v58 = vsub.f32 1.0, %v358_v50  ;;  %v413_v25 = vsub.f32 %v2278_v29, %v318_v49  ;;  %v414_v26 = vsub.f32 %v2281_v30, %v318_v49 }
  0x9d   : > { %v699_v32 = vrot.slane %v677_v15, %v2234_v18  ;;  %v1110_v61 = vrot.slane %v685_v20, %v2224_v11  ;;  %v1106_v43 = vrot.slane %v685_v20, %v2218_v9  ;;  %v707_v37 = vcombine.high %v685_v20, %v685_v20 }
  0x9e   : > { %v389_v33 = vmax.f32 %v373_v24, 0.0  ;;  %v390_v40 = vmax.f32 %v374_v58, 0.0  ;;  %v429_v54 = vand.u32 2147483647, %v413_v25  ;;  %v430_v12 = vand.u32 2147483647, %v414_v26 }
  0x9f   : > { %v1118_v19 = vrot.slane %v699_v32, %v2224_v11  ;;  %v1600_v8 = vmul.f32 %v1110_v61, %v2300_v36  ;;  %v1114_v42 = vrot.slane %v699_v32, %v2218_v9  ;;  %v1599_v29 = vmul.f32 %v1106_v43, %v2295_v23 }
  0xa0   : > { %v445_v30 = vsub.f32 1.0, %v429_v54  ;;  %v446_v44 = vsub.f32 1.0, %v430_v12  ;;  %v709_v46 = vcombine.high %v699_v32, %v699_v32  ;;  %v1126_v56 = vrot.slane %v707_v37, %v2224_v11 }
  0xa1   : > { %v1602_v39 = vmul.f32 %v1118_v19, %v2300_v36  ;;  %v1601_v1 = vmul.f32 %v1114_v42, %v2295_v23  ;;  %v1122_v7 = vrot.slane %v707_v37, %v2218_v9  ;;  %v706_v57 = vrot.slane %v678_v17, %v2234_v18 }
  0xa2   : > { %v461_v59 = vmax.f32 %v445_v30, 0.0  ;;  %v462_v60 = vmax.f32 %v446_v44, 0.0  ;;  %v1134_v35 = vrot.slane %v709_v46, %v2224_v11  ;;  %v1604_v45 = vmul.f32 %v1126_v56, %v2300_v36 }
  0xa3   : > { %v2000_v52 = vpack.c.bf16 %v1602_v39, %v1600_v8  ;;  %v2002_v22 = vpack.c.bf16 %v1601_v1, %v1599_v29  ;;  %v1130_v16 = vrot.slane %v709_v46, %v2218_v9  ;;  %v1603_v62 = vmul.f32 %v1122_v7, %v2295_v23 }
  0xa4   : > { %v477_v0 = vmul.f32 %v461_v59, %v389_v33  ;;  %v478_v2 = vmul.f32 %v462_v60, %v390_v40  ;;  %v1606_v4 = vmul.f32 %v1134_v35, %v2300_v36  ;;  %v1142_v47 = vrot.slane %v692_v51, %v2224_v11 }
  0xa5   : > { %2001 = vmatprep.subr.bf16.mxu1 %v2000_v52  ;;  %v1605_v3 = vmul.f32 %v1130_v16, %v2295_v23  ;;  %v1150_v31 = vrot.slane %v706_v57, %v2224_v11  ;;  %v1138_v6 = vrot.slane %v692_v51, %v2218_v9  ;;  %v1146_v55 = vrot.slane %v706_v57, %v2218_v9 }
  0xa6   : > { %v861_v38 = vcombine.low %v477_v0, %v478_v2  ;;  %2003 = vmatpush1.bf16.msra.mxu1 %v2002_v22  ;;  %v2004_v13 = vpack.c.bf16 %v1606_v4, %v1604_v45  ;;  %v1608_v28 = vmul.f32 %v1142_v47, %v2300_v36  ;;  %v862_v48 = vcombine.high %v477_v0, %v478_v2 }
  0xa7   : > { %v2006_v27 = vpack.c.bf16 %v1605_v3, %v1603_v62  ;;  %v1610_v21 = vmul.f32 %v1150_v31, %v2300_v36  ;;  %v1607_v14 = vmul.f32 %v1138_v6, %v2295_v23  ;;  %v1609_v5 = vmul.f32 %v1146_v55, %v2295_v23 }
  0xa8   : > { %v869_v53 = vrot.slane %v861_v38, %v2234_v18  ;;  %2005 = vmatprep.subr.bf16.mxu1 %v2004_v13  ;;  %v876_v10 = vrot.slane %v862_v48, %v2234_v18  ;;  %v708_v49 = vcombine.high %v692_v51, %v692_v51  ;;  %v710_v34 = vcombine.high %v706_v57, %v706_v57 }
  0xa9   : > { %v2008_v50 = vpack.c.bf16 %v1610_v21, %v1608_v28  ;;  %v2010_v15 = vpack.c.bf16 %v1609_v5, %v1607_v14 }
  0xaa   : > { %v877_v20 = vcombine.high %v869_v53, %v869_v53  ;;  %v885_v17 = vrot.slane %v869_v53, %v2234_v18  ;;  %2007 = vmatpush1.bf16.msra.mxu1 %v2006_v27  ;;  %v878_v24 = vcombine.high %v876_v10, %v876_v10  ;;  %v892_v58 = vrot.slane %v876_v10, %v2234_v18 }
  0xab   : > { %2009 = vmatprep.subr.bf16.mxu1 %v2008_v50  ;;  %v1158_v25 = vrot.slane %v708_v49, %v2224_v11  ;;  %v1166_v26 = vrot.slane %v710_v34, %v2224_v11  ;;  %v1154_v32 = vrot.slane %v708_v49, %v2218_v9  ;;  %v1162_v16 = vrot.slane %v710_v34, %v2218_v9 }
  0xac   : > { %v899_v61 = vrot.slane %v877_v20, %v2234_v18  ;;  %v1366_v51 = vrot.slane %v885_v17, %v2224_v11  ;;  %v1362_v43 = vrot.slane %v885_v17, %v2218_v9  ;;  %v907_v37 = vcombine.high %v885_v17, %v885_v17 }
  0xad   : > { %v906_v33 = vrot.slane %v878_v24, %v2234_v18  ;;  %v1398_v40 = vrot.slane %v892_v58, %v2224_v11  ;;  %v1394_v54 = vrot.slane %v892_v58, %v2218_v9  ;;  %v1612_v12 = vmul.f32 %v1158_v25, %v2300_v36 }
  0xae   : > { %v1374_v19 = vrot.slane %v899_v61, %v2224_v11  ;;  %v1664_v8 = vmul.f32 %v1366_v51, %v2300_v36  ;;  %v1370_v42 = vrot.slane %v899_v61, %v2218_v9  ;;  %v1663_v29 = vmul.f32 %v1362_v43, %v2295_v23  ;;  %2011 = vmatpush1.bf16.msra.mxu1 %v2010_v15 }
  0xaf   : > { %v909_v30 = vcombine.high %v899_v61, %v899_v61  ;;  %v1382_v44 = vrot.slane %v907_v37, %v2224_v11  ;;  %v1378_v18 = vrot.slane %v907_v37, %v2218_v9  ;;  %v1406_v46 = vrot.slane %v906_v33, %v2224_v11 }
  0xb0   : > { %v1666_v56 = vmul.f32 %v1374_v19, %v2300_v36  ;;  %v1665_v39 = vmul.f32 %v1370_v42, %v2295_v23  ;;  %v1672_v1 = vmul.f32 %v1398_v40, %v2300_v36  ;;  %v1402_v7 = vrot.slane %v906_v33, %v2218_v9 }
  0xb1   : > { %v1390_v57 = vrot.slane %v909_v30, %v2224_v11  ;;  %v1668_v59 = vmul.f32 %v1382_v44, %v2300_v36  ;;  %v1386_v60 = vrot.slane %v909_v30, %v2218_v9  ;;  %v1667_v35 = vmul.f32 %v1378_v18, %v2295_v23 }
  0xb2   : > { %v2064_v45 = vpack.c.bf16 %v1666_v56, %v1664_v8  ;;  %v2066_v52 = vpack.c.bf16 %v1665_v39, %v1663_v29  ;;  %v1674_v22 = vmul.f32 %v1406_v46, %v2300_v36  ;;  %v1671_v2 = vmul.f32 %v1394_v54, %v2295_v23 }
  0xb3   : > { %v1670_v62 = vmul.f32 %v1390_v57, %v2300_v36  ;;  %v1669_v0 = vmul.f32 %v1386_v60, %v2295_v23  ;;  %v1614_v4 = vmul.f32 %v1166_v26, %v2300_v36  ;;  %v1673_v47 = vmul.f32 %v1402_v7, %v2295_v23  ;;  %v2125_v26 = vld [vmem:[%s2241_s23] sm:$0x77] }
  0xb4   : > { %2065 = vmatprep.subr.bf16.mxu0 %v2064_v45  ;;  %v908_v3 = vcombine.high %v892_v58, %v892_v58  ;;  %v910_v31 = vcombine.high %v906_v33, %v906_v33  ;;  %v1611_v6 = vmul.f32 %v1154_v32, %v2295_v23  ;;  %v2072_v13 = vpack.c.bf16 %v1674_v22, %v1672_v1 }
  0xb5   : > { %2067 = vmatpush1.bf16.msra.mxu0 %v2066_v52  ;;  %v2068_v55 = vpack.c.bf16 %v1670_v62, %v1668_v59  ;;  %v2070_v38 = vpack.c.bf16 %v1669_v0, %v1667_v35  ;;  %v2012_v28 = vpack.c.bf16 %v1614_v4, %v1612_v12  ;;  %v1613_v21 = vmul.f32 %v1162_v16, %v2295_v23 }
  0xb6   : > { %v1414_v48 = vrot.slane %v908_v3, %v2224_v11  ;;  %v1422_v27 = vrot.slane %v910_v31, %v2224_v11  ;;  %v1410_v14 = vrot.slane %v908_v3, %v2218_v9  ;;  %v1418_v5 = vrot.slane %v910_v31, %v2218_v9 }
  0xb7   : > { %2069 = vmatprep.subr.bf16.mxu0 %v2068_v55  ;;  %2013 = vmatprep.subr.bf16.mxu1 %v2012_v28  ;;  %v2014_v49 = vpack.c.bf16 %v1613_v21, %v1611_v6  ;;  %v2074_v34 = vpack.c.bf16 %v1673_v47, %v1671_v2 }
  0xb8   : > { %v1676_v53 = vmul.f32 %v1414_v48, %v2300_v36  ;;  %v1678_v10 = vmul.f32 %v1422_v27, %v2300_v36  ;;  %v1675_v50 = vmul.f32 %v1410_v14, %v2295_v23  ;;  %v1677_v15 = vmul.f32 %v1418_v5, %v2295_v23 }
  0xb9   : > { %2071 = vmatpush1.bf16.msra.mxu0 %v2070_v38  ;;  %2015 = vmatpush1.bf16.msra.mxu1 %v2014_v49 }
  0xba   : > { %2073 = vmatprep.subr.bf16.mxu0 %v2072_v13  ;;  %v2076_v11 = vpack.c.bf16 %v1678_v10, %v1676_v53  ;;  %v2078_v20 = vpack.c.bf16 %v1677_v15, %v1675_v50 }
  0xbc   : > { %1750 = vmatmul.mubr.f32.vlgmr.msra.gmra.mrb[0].mxu1 %v2531_v41 }
  0xbd   : > { %2075 = vmatpush1.bf16.msra.mxu0 %v2074_v34 }
  0xbe   : > { %2077 = vmatprep.subr.bf16.mxu0 %v2076_v11 }
  0xc1   : > { %2079 = vmatpush1.bf16.msra.mxu0 %v2078_v20 }
  0xc4   : > { %1821 = vmatmul.mubr.f32.vlgmr.msra.gmra.mrb[0].mxu0 %v2657_v63 }
 0x18f   : > { %v1751_v9 = vpop.f32.mrb[0].mxu1 }
 0x190   : > { %v1753_v36 = vpop.f32.mrb[1].mxu1 }
 0x197   : > { %v1822_v17 = vpop.f32.mrb[0].mxu0 }
 0x198   : > { %v1823_v24 = vadd.f32 %v1822_v17, %v1751_v9  ;;  %v1824_v58 = vpop.f32.mrb[1].mxu0 }
 0x199   : > { %v1825_v25 = vadd.f32 %v1824_v58, %v1753_v36 }
 0x19b   : > { %v1829_v23 = vcombine.low %v1823_v24, %v1825_v25 }
 0x19d   : > { %v1831_v32 = vadd.f32 %v2125_v26, %v1829_v23 }
 0x19f   : > { %1832 = vst [vmem:[%s201_s30] sm:$0x77] %v1831_v32 }
 0x1a0 PF: > { %s12_s13 = sadd.s32 1, %s2164_s13   ;;  %s2776_s9 = smov %s2156_s11 }
 0x1a1   : > { %p9_p7 = scmp.ge.s32.totalorder %s12_s13, 6   ;;  %s2777_s10 = smov %s2160_s12 }
 0x1a2   : > { %s2778_s11 = smov %s2781_s14  ;;  %s2779_s12 = smov %s2785_s15 }
 0x1a3   :  { %11 = sbr.rel (!%p9_p7) target bundleno = 3 (0x3), region = 61 }

</bundles_post_ra>
